<compile_context>
chip_gen: v5e
topology: v5e:2x2
jax: 0.10.0
libtpu: 0.0.40
codegen_flags: <defaults>
</compile_context>

<pallas_src>
import jax
import jax.numpy as jnp
from jax.experimental import pallas as pl
from jax.experimental.pallas import tpu as pltpu


def _round_up(x, m):
    return ((x + m - 1) // m) * m


def rawnet_kernel(x_ref, w1_ref, b1_ref, w2_ref, b2_ref, w3_ref, b3_ref, o_ref):
    # x_ref: [2, TILE_N]   w1: [H, 2]   w2: [H, H]   w3: [1, H]   biases: [out, 1]
    x = x_ref[...]                                             # [2, TILE_N]
    w1 = w1_ref[...]                                           # [H, 2]

    # --- layer 1 (K=2): do it on the VPU, the MXU would be ~2/256 utilized ---
    h1 = (w1[:, 0:1] * x[0:1, :]
          + w1[:, 1:2] * x[1:2, :]
          + b1_ref[...])                                       # [H, TILE_N]
    h1 = jnp.tanh(h1)

    # --- layer 2 (HxH): MXU matmul, f32 accumulation ---
    h2 = jnp.dot(w2_ref[...], h1,
                 preferred_element_type=jnp.float32) + b2_ref[...]   # [H, TILE_N]
    h2 = jnp.tanh(h2)

    # --- output layer (1xH) + sigmoid expressed via a single tanh ---
    logits = jnp.dot(w3_ref[...], h2,
                     preferred_element_type=jnp.float32) + b3_ref[...]  # [1, TILE_N]
    o_ref[...] = 0.5 * jnp.tanh(0.5 * logits) + 0.5            # == sigmoid(logits)


def rawnet_forward(x, params, *, tile_n=2048):
    """x: [N, 2] float32.  params in PyTorch Linear layout (see init_params)."""
    w1, b1, w2, b2, w3, b3 = params
    n = x.shape[0]
    num_hid = w1.shape[0]

    # Batch on the lane axis.
    x_t = jnp.asarray(x, jnp.float32).T                        # [2, N]

    # Lane tiles must be a multiple of 128; don't over-tile tiny batches.
    tile_n = min(tile_n, _round_up(max(n, 1), 128))
    n_pad = _round_up(n, tile_n)
    if n_pad != n:
        x_t = jnp.pad(x_t, ((0, 0), (0, n_pad - n)))
    grid = (n_pad // tile_n,)

    resident = lambda arr: pl.BlockSpec(arr.shape, lambda i: (0, 0))  # VMEM-resident

    out_t = pl.pallas_call(
        rawnet_kernel,
        out_shape=jax.ShapeDtypeStruct((1, n_pad), jnp.float32),
        grid=grid,
        in_specs=[
            pl.BlockSpec((2, tile_n), lambda i: (0, i)),       # x tile (streamed)
            resident(w1), resident(b1),
            resident(w2), resident(b2),
            resident(w3), resident(b3),
        ],
        out_specs=pl.BlockSpec((1, tile_n), lambda i: (0, i)),  # lane-dense stores
        compiler_params=pltpu.CompilerParams(
            dimension_semantics=("parallel",),                  # megacore on v7x
            vmem_limit_bytes=32 * 1024 * 1024,                  # covers v5e's 16MiB default
        ),
    )(x_t, w1, b1, w2, b2, w3, b3)

    # Back to the PyTorch-facing [N, 1] layout, dropping padded lanes.
    return out_t[:, :n].T


def init_params(key, num_hid):
    # PyTorch Linear(in, out): weight [out, in], bias [out] (kept 2-D as [out, 1]).
    k1, k2, k3, k4, k5, k6 = jax.random.split(key, 6)

    def lin(kw, kb, fan_in, fan_out):
        bound = 1.0 / jnp.sqrt(fan_in)
        w = jax.random.uniform(kw, (fan_out, fan_in), jnp.float32, -bound, bound)
        b = jax.random.uniform(kb, (fan_out, 1), jnp.float32, -bound, bound)
        return w, b

    w1, b1 = lin(k1, k2, 2, num_hid)
    w2, b2 = lin(k3, k4, num_hid, num_hid)
    w3, b3 = lin(k5, k6, num_hid, 1)
    return (w1, b1, w2, b2, w3, b3)


def rawnet_reference(x, params):
    w1, b1, w2, b2, w3, b3 = params
    h1 = jnp.tanh(x @ w1.T + b1.T)
    h2 = jnp.tanh(h1 @ w2.T + b2.T)
    return jax.nn.sigmoid(h2 @ w3.T + b3.T)


if __name__ == "__main__":
    num_hid = 32
    key = jax.random.PRNGKey(0)
    kp, kx1, kx2 = jax.random.split(key, 3)
    params = init_params(kp, num_hid)

    # Small shape consistent with the module (batch=8, in_features=2).
    x_small = jax.random.normal(kx1, (8, 2), dtype=jnp.float32)
    out_small = jax.block_until_ready(rawnet_forward(x_small, params))
    ref_small = rawnet_reference(x_small, params)
    assert out_small.shape == (8, 1)
    assert jnp.allclose(out_small, ref_small, atol=1e-5), "mismatch vs reference (small)"

    # Larger, non-multiple-of-tile batch to exercise the tiled grid + padding path.
    x_big = jax.random.normal(kx2, (3000, 2), dtype=jnp.float32)
    out_big = jax.block_until_ready(rawnet_forward(x_big, params))
    ref_big = rawnet_reference(x_big, params)
    assert out_big.shape == (3000, 1)
    assert jnp.allclose(out_big, ref_big, atol=1e-5), "mismatch vs reference (big)"

    print("KERNEL_OK")
</pallas_src>

<mosaic_0001>
module attributes {stable_mosaic.version = 11 : i64} {
  func.func @rawnet_kernel(%arg0: i32, %arg1: memref<2x128xf32, #tpu.memory_space<vmem>>, %arg2: memref<32x2xf32, #tpu.memory_space<vmem>>, %arg3: memref<32x1xf32, #tpu.memory_space<vmem>>, %arg4: memref<32x32xf32, #tpu.memory_space<vmem>>, %arg5: memref<32x1xf32, #tpu.memory_space<vmem>>, %arg6: memref<1x32xf32, #tpu.memory_space<vmem>>, %arg7: memref<1x1xf32, #tpu.memory_space<vmem>>, %arg8: memref<1x128xf32, #tpu.memory_space<vmem>>) attributes {dimension_semantics = [#tpu.dimension_semantics<parallel>], iteration_bounds = array<i64: 1>, scalar_prefetch = 0 : i64, scratch_operands = 0 : i64, tpu.core_type = #tpu.core_type<tc>, window_params = [{transform_indices = @transform_0, window_bounds = array<i64: 2, 128>}, {pipeline_mode = #tpu.pipeline_mode<synchronous>, transform_indices = @transform_1, window_bounds = array<i64: 32, 2>}, {pipeline_mode = #tpu.pipeline_mode<synchronous>, transform_indices = @transform_2, window_bounds = array<i64: 32, 1>}, {pipeline_mode = #tpu.pipeline_mode<synchronous>, transform_indices = @transform_3, window_bounds = array<i64: 32, 32>}, {pipeline_mode = #tpu.pipeline_mode<synchronous>, transform_indices = @transform_4, window_bounds = array<i64: 32, 1>}, {pipeline_mode = #tpu.pipeline_mode<synchronous>, transform_indices = @transform_5, window_bounds = array<i64: 1, 32>}, {pipeline_mode = #tpu.pipeline_mode<synchronous>, transform_indices = @transform_6, window_bounds = array<i64: 1, 1>}, {transform_indices = @transform_7, window_bounds = array<i64: 1, 128>}]} {
    %c0 = arith.constant 0 : index
    %c0_0 = arith.constant 0 : index
    %0 = vector.load %arg1[%c0, %c0_0] : memref<2x128xf32, #tpu.memory_space<vmem>>, vector<2x128xf32>
    %c0_1 = arith.constant 0 : index
    %c0_2 = arith.constant 0 : index
    %1 = vector.load %arg2[%c0_1, %c0_2] : memref<32x2xf32, #tpu.memory_space<vmem>>, vector<32x2xf32>
    %2 = vector.extract_strided_slice %1 {offsets = [0, 0], sizes = [32, 1], strides = [1, 1]} : vector<32x2xf32> to vector<32x1xf32>
    %3 = vector.extract_strided_slice %0 {offsets = [0, 0], sizes = [1, 128], strides = [1, 1]} : vector<2x128xf32> to vector<1x128xf32>
    %4 = vector.broadcast %2 : vector<32x1xf32> to vector<32x128xf32>
    %5 = vector.broadcast %3 : vector<1x128xf32> to vector<32x128xf32>
    %6 = arith.mulf %4, %5 : vector<32x128xf32>
    %7 = vector.extract_strided_slice %1 {offsets = [0, 1], sizes = [32, 1], strides = [1, 1]} : vector<32x2xf32> to vector<32x1xf32>
    %8 = vector.extract_strided_slice %0 {offsets = [1, 0], sizes = [1, 128], strides = [1, 1]} : vector<2x128xf32> to vector<1x128xf32>
    %9 = vector.broadcast %7 : vector<32x1xf32> to vector<32x128xf32>
    %10 = vector.broadcast %8 : vector<1x128xf32> to vector<32x128xf32>
    %11 = arith.mulf %9, %10 : vector<32x128xf32>
    %12 = arith.addf %6, %11 : vector<32x128xf32>
    %c0_3 = arith.constant 0 : index
    %c0_4 = arith.constant 0 : index
    %13 = vector.load %arg3[%c0_3, %c0_4] : memref<32x1xf32, #tpu.memory_space<vmem>>, vector<32x1xf32>
    %14 = vector.broadcast %13 : vector<32x1xf32> to vector<32x128xf32>
    %15 = arith.addf %12, %14 : vector<32x128xf32>
    %16 = math.tanh %15 : vector<32x128xf32>
    %c0_5 = arith.constant 0 : index
    %c0_6 = arith.constant 0 : index
    %17 = vector.load %arg4[%c0_5, %c0_6] : memref<32x32xf32, #tpu.memory_space<vmem>>, vector<32x32xf32>
    %cst = arith.constant dense<0.000000e+00> : vector<32x128xf32>
    %18 = tpu.matmul %17, %16, %cst {dimension_numbers = #tpu.dot_dimension_numbers<[1], [0], [0], [1], [0, 0, 1, 1], [], []>} : vector<32x32xf32>, vector<32x128xf32>, vector<32x128xf32> -> vector<32x128xf32>
    %c0_7 = arith.constant 0 : index
    %c0_8 = arith.constant 0 : index
    %19 = vector.load %arg5[%c0_7, %c0_8] : memref<32x1xf32, #tpu.memory_space<vmem>>, vector<32x1xf32>
    %20 = vector.broadcast %19 : vector<32x1xf32> to vector<32x128xf32>
    %21 = arith.addf %18, %20 : vector<32x128xf32>
    %22 = math.tanh %21 : vector<32x128xf32>
    %c0_9 = arith.constant 0 : index
    %c0_10 = arith.constant 0 : index
    %23 = vector.load %arg6[%c0_9, %c0_10] : memref<1x32xf32, #tpu.memory_space<vmem>>, vector<1x32xf32>
    %cst_11 = arith.constant dense<0.000000e+00> : vector<1x128xf32>
    %24 = tpu.matmul %23, %22, %cst_11 {dimension_numbers = #tpu.dot_dimension_numbers<[1], [0], [0], [1], [0, 0, 1, 1], [], []>} : vector<1x32xf32>, vector<32x128xf32>, vector<1x128xf32> -> vector<1x128xf32>
    %c0_12 = arith.constant 0 : index
    %c0_13 = arith.constant 0 : index
    %25 = vector.load %arg7[%c0_12, %c0_13] : memref<1x1xf32, #tpu.memory_space<vmem>>, vector<1x1xf32>
    %26 = vector.broadcast %25 : vector<1x1xf32> to vector<1x128xf32>
    %27 = arith.addf %24, %26 : vector<1x128xf32>
    %cst_14 = arith.constant 5.000000e-01 : f32
    %28 = vector.broadcast %cst_14 : f32 to vector<1x128xf32>
    %29 = arith.mulf %28, %27 : vector<1x128xf32>
    %30 = math.tanh %29 : vector<1x128xf32>
    %cst_15 = arith.constant 5.000000e-01 : f32
    %31 = vector.broadcast %cst_15 : f32 to vector<1x128xf32>
    %32 = arith.mulf %31, %30 : vector<1x128xf32>
    %cst_16 = arith.constant 5.000000e-01 : f32
    %33 = vector.broadcast %cst_16 : f32 to vector<1x128xf32>
    %34 = arith.addf %32, %33 : vector<1x128xf32>
    %c0_17 = arith.constant 0 : index
    %c0_18 = arith.constant 0 : index
    %35 = vector.load %arg8[%c0_17, %c0_18] : memref<1x128xf32, #tpu.memory_space<vmem>>, vector<1x128xf32>
    tpu.vector_store %arg8[%c0_17, %c0_18], %34 {strides = array<i32>} : memref<1x128xf32, #tpu.memory_space<vmem>>, vector<1x128xf32>,
    return
  }
  func.func @transform_0(%arg0: i32) -> (i32, i32) {
    %c0_i32 = arith.constant 0 : i32
    %c0_i32_0 = arith.constant 0 : i32
    return %c0_i32, %arg0 : i32, i32
  }
  func.func @transform_1(%arg0: i32) -> (i32, i32) {
    %c0_i32 = arith.constant 0 : i32
    %c0_i32_0 = arith.constant 0 : i32
    %c0_i32_1 = arith.constant 0 : i32
    return %c0_i32, %c0_i32_0 : i32, i32
  }
  func.func @transform_2(%arg0: i32) -> (i32, i32) {
    %c0_i32 = arith.constant 0 : i32
    %c0_i32_0 = arith.constant 0 : i32
    %c0_i32_1 = arith.constant 0 : i32
    return %c0_i32, %c0_i32_0 : i32, i32
  }
  func.func @transform_3(%arg0: i32) -> (i32, i32) {
    %c0_i32 = arith.constant 0 : i32
    %c0_i32_0 = arith.constant 0 : i32
    %c0_i32_1 = arith.constant 0 : i32
    return %c0_i32, %c0_i32_0 : i32, i32
  }
  func.func @transform_4(%arg0: i32) -> (i32, i32) {
    %c0_i32 = arith.constant 0 : i32
    %c0_i32_0 = arith.constant 0 : i32
    %c0_i32_1 = arith.constant 0 : i32
    return %c0_i32, %c0_i32_0 : i32, i32
  }
  func.func @transform_5(%arg0: i32) -> (i32, i32) {
    %c0_i32 = arith.constant 0 : i32
    %c0_i32_0 = arith.constant 0 : i32
    %c0_i32_1 = arith.constant 0 : i32
    return %c0_i32, %c0_i32_0 : i32, i32
  }
  func.func @transform_6(%arg0: i32) -> (i32, i32) {
    %c0_i32 = arith.constant 0 : i32
    %c0_i32_0 = arith.constant 0 : i32
    %c0_i32_1 = arith.constant 0 : i32
    return %c0_i32, %c0_i32_0 : i32, i32
  }
  func.func @transform_7(%arg0: i32) -> (i32, i32) {
    %c0_i32 = arith.constant 0 : i32
    %c0_i32_0 = arith.constant 0 : i32
    return %c0_i32, %arg0 : i32, i32
  }
}

</mosaic_0001>

<bundles_post_ra>
// kernel: tpu_custom_call.1
= control target key start
LH: loop header
LB: loop body
LE: loop exit
PB: predicated region body
PF: predicated region fallthrough
CT: control target
= control target key end

     0   :  { %s419_s0 = inlined_call_operand.vmem [shape: f32[2,128], index: 0, kind: input, shape index: {}]   ;;  %s420_s1 = inlined_call_operand.vmem [shape: f32[32,2], index: 1, kind: input, shape index: {}]   ;;  %s421_s2 = inlined_call_operand.vmem [shape: f32[32,1], index: 2, kind: input, shape index: {}]   ;;  %s422_s3 = inlined_call_operand.vmem [shape: f32[32,32], index: 3, kind: input, shape index: {}]   ;;  %s423_s4 = inlined_call_operand.vmem [shape: f32[32,1], index: 4, kind: input, shape index: {}]   ;;  %s424_s5 = inlined_call_operand.vmem [shape: f32[1,32], index: 5, kind: input, shape index: {}]   ;;  %s425_s6 = inlined_call_operand.<no memory space> [shape: f32[1,1], index: 6, kind: input, shape index: {}]   ;;  %s426_s7 = inlined_call_operand.hbm [shape: f32[1,128], index: 7, kind: output, shape index: {}]  }
   0x1   :  { %v12_v0 = vstv %s425_s6 }
   0x2   :  { %13 = vst [vmem:[#allocation2] sm:$0x1] %v12_v0 }
   0x3   :  { %v33_v1 = vld [vmem:[%s420_s1 + $0x18] sm:$0xff]  ;;  %v32_v2 = vld [vmem:[%s420_s1 + $0x10] sm:$0xff]  ;;  %v311_v3 = vmov 0   ;;  %v31_v4 = vld [vmem:[%s420_s1 + $0x8] sm:$0xff] }
   0x4   :  { %260 = vset.pattern.permute.xlu1 %v311_v3  ;;  %258 = vset.pattern.permute.xlu0 %v311_v3 }
   0x5   :  { %51 = vperm.xlu0 %258, %v33_v1   ;;  %46 = vperm.xlu1 %260, %v32_v2  }
   0x6   :  { %262 = vset.pattern.permute.xlu2 %v311_v3 }
   0x7   :  { %14 = vsyncpa [#allocation4], 0  ;;  %41 = vperm.xlu2 %262, %v31_v4   ;;  %v312_v5 = vmov 1   ;;  %v30_v6 = vld [vmem:[%s420_s1] sm:$0xff]  ;;  %v87_v7 = vld [vmem:[%s421_s2 + $0x18] sm:$0xff]  ;;  %vm144_vm0 = vcmask 261120  }
   0x8   :  { %v86_v8 = vld [vmem:[%s421_s2 + $0x10] sm:$0xff]  ;;  %v84_v9 = vld [vmem:[%s421_s2] sm:$0xff]  ;;  %v85_v10 = vld [vmem:[%s421_s2 + $0x8] sm:$0xff]  ;;  %s313_s9 = smov [#allocation3]   ;;  %s233_s13 = sshll.u32 %s426_s7, 4  ;;  %s234_s13 = int_to_ptr.hbm [resolvable:$true] %s233_s13 }
   0x9   :  { %v123_v11 = vld [vmem:[%s423_s4 + $0x18] sm:$0xff]  ;;  %v191_v12 = vld [vmem:[#allocation2] sm:$0x1]  ;;  %v122_v13 = vld [vmem:[%s423_s4 + $0x10] sm:$0xff]  ;;  %s231_s10 = sshll.u32 %s313_s9, 4  ;;  %s232_s10 = int_to_ptr.vmem [resolvable:$true] %s231_s10 }
   0xa   :  { %v121_v14 = vld [vmem:[%s423_s4 + $0x8] sm:$0xff]  ;;  %v120_v15 = vld [vmem:[%s423_s4] sm:$0xff]  ;;  %v118_v53 = vld [vmem:[%s422_s3 + $0x10] sm:$0xff] }
   0xb   :  { %v29_v22 = vld [vmem:[%s419_s0] sm:$0x3]  ;;  %v117_v52 = vld [vmem:[%s422_s3 + $0x8] sm:$0xff]  ;;  %v119_v54 = vld [vmem:[%s422_s3 + $0x18] sm:$0xff] }
   0xc   :  { %v75_v23 = vperm.slane %v29_v22, 1  ;;  %v54_v24 = vperm.slane %v29_v22, 0  ;;  %v116_v50 = vld [vmem:[%s422_s3] sm:$0xff] }
   0xd   :  { %259 = vset.pattern.permute.xlu0 %v312_v5  ;;  %261 = vset.pattern.permute.xlu1 %v312_v5 }
   0xe   :  { %72 = vperm.xlu0 %259, %v33_v1   ;;  %68 = vperm.xlu1 %261, %v32_v2  }
   0xf   :  { %263 = vset.pattern.permute.xlu2 %v312_v5 }
  0x10   :  { %64 = vperm.xlu2 %263, %v31_v4  }
  0x16   :  { %264 = vset.pattern.permute.xlu1 %v311_v3  ;;  %60 = vperm.xlu0 %259, %v30_v6  }
  0x17   :  { %105 = vperm.xlu1 %264, %v87_v7  }
  0x18   :  { %265 = vset.pattern.permute.xlu2 %v311_v3 }
  0x19   :  { %36 = vperm.xlu2 %265, %v30_v6   ;;  %v190_v6 = vld [vmem:[%s424_s5] sm:$0x1] }
  0x1e   :  { %266 = vset.pattern.permute.xlu0 %v311_v3 }
  0x1f   :  { %100 = vperm.xlu1 %264, %v86_v8   ;;  %90 = vperm.xlu0 %266, %v84_v9  }
  0x21   :  { %95 = vperm.xlu2 %265, %v85_v10  }
  0x27   :  { %141 = vperm.xlu1 %264, %v123_v11   ;;  %194 = vperm.xlu0 %266, %v191_v12  }
  0x29   :  { %136 = vperm.xlu2 %265, %v122_v13  }
  0x2f   :  { %131 = vperm.xlu1 %264, %v121_v14  }
  0x31   :  { %126 = vperm.xlu2 %265, %v120_v15  }
  0x61   :  { %v42_v16 = vpop.permute.xlu2 %41 }
  0x62   :  { %v56_v31 = vmul.f32 %v54_v24, %v42_v16 }
  0x6a   :  { %v65_v19 = vpop.permute.xlu2 %64 }
  0x6b   :  { %v77_v32 = vmul.f32 %v75_v23, %v65_v19 }
  0x6d   :  { %v81_v37 = vadd.f32 %v77_v32, %v56_v31 }
  0x73   :  { %v37_v26 = vpop.permute.xlu2 %36 }
  0x74   :  { %v55_v35 = vmul.f32 %v54_v24, %v37_v26 }
  0x77   :  { %v47_v17 = vpop.permute.xlu1 %46  ;;  %v52_v18 = vpop.permute.xlu0 %51 }
  0x78   :  { %v58_v27 = vmul.f32 %v54_v24, %v52_v18  ;;  %v57_v36 = vmul.f32 %v54_v24, %v47_v17 }
  0x7b   :  { %v96_v39 = vpop.permute.xlu2 %95 }
  0x7c   :  { %v109_v44 = vadd.f32 %v96_v39, %v81_v37 }
  0x80   :  { %v73_v20 = vpop.permute.xlu0 %72  ;;  %v69_v21 = vpop.permute.xlu1 %68 }
  0x81   :  { %v79_v25 = vmul.f32 %v75_v23, %v73_v20  ;;  %v78_v34 = vmul.f32 %v75_v23, %v69_v21 }
  0x83   :  { %v83_v29 = vadd.f32 %v79_v25, %v58_v27  ;;  %v82_v40 = vadd.f32 %v78_v34, %v57_v36  ;;  %v137_v57 = vpop.permute.xlu2 %136 }
  0x88   :  { %v61_v28 = vpop.permute.xlu0 %60 }
  0x89   :  { %v106_v30 = vpop.permute.xlu1 %105  ;;  %v76_v38 = vmul.f32 %v75_v23, %v61_v28 }
  0x8a   :  { %v111_v33 = vadd.f32 %v106_v30, %v83_v29 }
  0x8b   :  { %v80_v46 = vadd.f32 %v76_v38, %v55_v35  ;;  %v127_v1 = vpop.permute.xlu2 %126 }
  0x8c   :  { %267 = vtanh.f32 %v111_v33 }
  0x91   :  { %v101_v41 = vpop.permute.xlu1 %100  ;;  %v91_v42 = vpop.permute.xlu0 %90 }
  0x92   :  { %v268_v43 = vpop.eup %267  ;;  %v110_v45 = vadd.f32 %v101_v41, %v82_v40  ;;  %v108_v47 = vadd.f32 %v91_v42, %v80_v46 }
  0x93   :  { %169 = vmatpush.msra.mxu0 %v268_v43  ;;  %247 = vmatpush.msra.mxu2 %v268_v43 }
  0x94   :  { %269 = vtanh.f32 %v110_v45  ;;  %248 = vmatpush.msra.mxu3 %v268_v43 }
  0x95   :  { %271 = vtanh.f32 %v109_v44 }
  0x96   :  { %273 = vtanh.f32 %v108_v47 }
  0x99   :  { %v142_v55 = vpop.permute.xlu1 %141  ;;  %v195_v8 = vpop.permute.xlu0 %194 }
  0x9a   :  { %v270_v48 = vpop.eup %269  ;;  %v197_v9 = vperm.slane %v195_v8, 0 }
  0x9b   :  { %170 = vmatpush.msra.mxu0 %v270_v48  ;;  %249 = vmatpush.msra.mxu2 %v270_v48  ;;  %v272_v49 = vpop.eup %271 }
  0x9c   :  { %250 = vmatpush.msra.mxu3 %v270_v48  ;;  %v274_v51 = vpop.eup %273 }
  0x9d   :  { %171 = vmatpush.msra.mxu0 %v272_v49  ;;  %251 = vmatpush.msra.mxu2 %v272_v49 }
  0x9e   :  { %252 = vmatpush.msra.mxu3 %v272_v49 }
  0x9f   :  { %172 = vmatpush.msra.mxu0 %v274_v51  ;;  %253 = vmatpush.msra.mxu2 %v274_v51 }
  0xa0   :  { %254 = vmatpush.msra.mxu3 %v274_v51  ;;  %242 = vmatmul.msk.f32.vlgmr.msra.gmra.mxu0 %vm144_vm0, %v116_v50 }
  0xa1   :  { %243 = vmatmul.msk.f32.vlgmr.msra.gmra.mxu2 %vm144_vm0, %v117_v52  ;;  %244 = vmatmul.msk.f32.vlgmr.msra.gmra.mxu3 %vm144_vm0, %v118_v53  ;;  %v132_v62 = vpop.permute.xlu1 %131 }
  0xa9   :  { %245 = vmatmul.msk.f32.gmra.mxu3 %vm144_vm0, %v119_v54 }
 0x11d   :  { %v174_v63 = vpop.f32.mrf.mxu0 }
 0x11e   :  { %v175_v2 = vadd.f32 %v174_v63, %v127_v1 }
 0x124   :  { %v180_v56 = vpop.f32.mrf.mxu3  ;;  %v177_v58 = vpop.f32.mrf.mxu2 }
 0x125   :  { %v181_v60 = vadd.f32 %v180_v56, %v137_v57  ;;  %v178_v0 = vadd.f32 %v177_v58, %v132_v62 }
 0x12c   :  { %v183_v59 = vpop.f32.mrf.mxu3 }
 0x12d   :  { %v184_v61 = vadd.f32 %v183_v59, %v142_v55 }
 0x12f   :  { %275 = vtanh.f32 %v184_v61 }
 0x130   :  { %277 = vtanh.f32 %v181_v60 }
 0x131   :  { %279 = vtanh.f32 %v178_v0 }
 0x132   :  { %281 = vtanh.f32 %v175_v2 }
 0x135   :  { %v276_v3 = vpop.eup %275 }
 0x136   :  { %213 = vmatpush.msra.mxu1 %v276_v3  ;;  %v278_v4 = vpop.eup %277 }
 0x137   :  { %v280_v5 = vpop.eup %279 }
 0x138   :  { %214 = vmatpush.msra.mxu1 %v278_v4  ;;  %v282_v7 = vpop.eup %281 }
 0x13a   :  { %215 = vmatpush.msra.mxu1 %v280_v5 }
 0x13c   :  { %216 = vmatpush.msra.mxu1 %v282_v7 }
 0x13d   :  { %246 = vmatmul.msk.f32.vlgmr.msra.gmra.mxu1 %vm144_vm0, %v190_v6 }
 0x1ba   :  { %v218_v10 = vpop.f32.mrf.mxu1 }
 0x1bb   :  { %v219_v11 = vadd.f32 %v218_v10, %v197_v9 }
 0x1bd   :  { %v221_v12 = vmul.f32 0.5, %v219_v11 }
 0x1bf   :  { %283 = vtanh.f32 %v221_v12 }
 0x1c5   :  { %v284_v13 = vpop.eup %283 }
 0x1c6   :  { %v223_v14 = vmul.f32 0.5, %v284_v13 }
 0x1c8   :  { %v224_v15 = vadd.f32 0.5, %v223_v14 }
 0x1ca   :  { %225 = vst [vmem:[#allocation3] sm:$0x1] %v224_v15 }
 0x1cb   :  { %236 = dma.vmem_to_hbm [thread:$0]  %s232_s10, 16, %s234_s13, [#allocation4]  }
 0x1cc   :  { %309 = dma.done.wait [#allocation4], 16  }
 0x1cd   :  { %310 = vsyncadd [#allocation4], 4294967280 }
 0x1ce   :  { %241 = vsyncpa [#allocation4], 1 }

</bundles_post_ra>
